<compile_context>
chip_gen: v7x
topology: tpu7x:2x2x1
jax: 0.10.0
libtpu: 0.0.40
codegen_flags: <defaults>
</compile_context>

<pallas_src>
import functools
import math

import jax
import jax.numpy as jnp
from jax import lax
from jax.experimental import pallas as pl
from jax.experimental.pallas import tpu as pltpu

_LOG_1E_4 = math.log(1e-4)


def _round_up(x, m):
    return (x + m - 1) // m * m


def _symetric_bce_block_kernel(preds_ref, targets_ref, out_ref, *,
                               alpha_scale, beta_scale, hard_labels,
                               rows, block_rows, ragged):
    """Partial sum over one (block_rows, width) tile of
         alpha_scale * bce_with_logits(x, t) - beta_scale * sigmoid(x) * log(clamp(t))."""
    x = preds_ref[...].astype(jnp.float32)     # logits tile
    t = targets_ref[...].astype(jnp.float32)   # labels tile

    # --- shared transcendental: e = exp(-|x|), reused by BCE and sigmoid (EUP #1)
    e = jnp.exp(-jnp.abs(x))
    d = 1.0 + e                                # d in (1, 2]

    # BCEWithLogits (stable): max(x,0) - x*t + log(1 + exp(-|x|)) = ... + log(d)  (EUP #2)
    bce_elem = jnp.maximum(x, 0.0) - x * t + jnp.log(d)

    # sigmoid(x) = where(x>=0, 1, e) / d without the EUP reciprocal:
    # affine minimax seed of 1/d on [1,2] (|rel err| <= 1/17) + 3 Newton steps
    # (pure VPU) -> full f32 accuracy.
    inv = (24.0 / 17.0) - (8.0 / 17.0) * d
    inv = inv * (2.0 - d * inv)
    inv = inv * (2.0 - d * inv)
    inv = inv * (2.0 - d * inv)
    p = jnp.clip(jnp.where(x >= 0.0, 1.0, e) * inv, 1e-7, 1.0)

    if hard_labels:
        # targets are {0,1}: log(clamp(t,1e-4,1)) is a pure VPU select.
        log_lbl = jnp.where(t >= 0.5, 0.0, _LOG_1E_4)
    else:
        log_lbl = jnp.log(jnp.clip(t, 1e-4, 1.0))          # EUP #3 (soft labels)

    contrib = alpha_scale * bce_elem - (beta_scale * p) * log_lbl

    def _store(vals):
        # One small reduce per tile; broadcast the scalar into a lane-dense
        # (8,128) output block (unmasked stores). Final tiny sum happens in JAX.
        out_ref[...] = jnp.full(out_ref.shape, jnp.sum(vals), jnp.float32)

    if ragged:
        i = pl.program_id(0)
        is_last = i == pl.num_programs(0) - 1

        @pl.when(jnp.logical_not(is_last))
        def _():
            _store(contrib)                     # full tiles: no mask work at all

        @pl.when(is_last)
        def _():
            # Rows beyond the array extent contain stale VMEM; mask BEFORE the
            # reduce (where-select also kills any NaN from garbage data).
            rem = rows - i * block_rows         # valid rows in this block
            row = lax.broadcasted_iota(jnp.int32, contrib.shape, 0)
            _store(jnp.where(row < rem, contrib, 0.0))
    else:
        _store(contrib)


def _choose_layout(total):
    """Zero-copy (rows, width) re-tiling of a flat, contiguous length-`total` array."""
    for w in (512, 384, 256, 128):              # lane-dense widths first
        if total % w == 0:
            return total // w, w
    for w in range(512, 0, -1):                 # widest zero-copy divisor otherwise
        if total % w == 0:
            return total // w, w
    return total, 1                             # unreachable


def symetric_bce_loss(preds, targets, alpha, beta, *, hard_labels=False,
                      block_rows=None, working_set_bytes=8 << 20):
    """Pallas forward of SymetricBCELoss. preds/targets: (N, C, ...) logits/labels (dim=1 = classes).

    hard_labels=True may be used when targets are exactly {0,1}; it removes one
    EUP transcendental per element and is numerically identical in that case.
    """
    assert preds.shape == targets.shape and preds.ndim >= 2
    total = preds.size
    num_classes = preds.shape[1]
    alpha_scale = float(alpha) / float(total)                 # mean over all elements
    beta_scale = float(beta) * num_classes / float(total)     # sum over dim=1, mean over rest

    # Metadata-only reshape (contiguous array): no HBM copy, no padding.
    rows, width = _choose_layout(total)
    p2 = preds.reshape(rows, width)
    t2 = targets.reshape(rows, width)

    # --- block sizing -------------------------------------------------------
    if rows <= 8:
        br = rows                               # block dim == full array dim (allowed)
    elif block_rows is not None:
        br = min(max(8, _round_up(block_rows, 8)), _round_up(rows, 8))
    else:
        wpad = _round_up(width, 128)            # VMEM pads lanes to 128
        per_row = wpad * (preds.dtype.itemsize + targets.dtype.itemsize)
        # working_set_bytes covers both inputs double-buffered (~2 MiB/input/buffer
        # at f32 width 512); leaves room for elementwise temporaries under the
        # 48 MiB scoped limit on every generation incl. v7x (64 MiB physical).
        br = max(8, (working_set_bytes // (2 * per_row)) // 8 * 8)
        if rows >= 16:
            # keep >= 2 grid blocks so both v7x TensorCores get work
            br = min(br, _round_up((rows + 1) // 2, 8))
        br = min(br, _round_up(rows, 8))
    num_blocks = int(pl.cdiv(rows, br))
    ragged = (rows % br) != 0

    kernel = functools.partial(
        _symetric_bce_block_kernel,
        alpha_scale=alpha_scale, beta_scale=beta_scale,
        hard_labels=hard_labels, rows=rows, block_rows=br, ragged=ragged)

    cost = pl.CostEstimate(
        flops=32 * total,
        transcendentals=(2 if hard_labels else 3) * total,
        bytes_accessed=total * (preds.dtype.itemsize + targets.dtype.itemsize)
        + num_blocks * 8 * 128 * 4)

    partials = pl.pallas_call(
        kernel,
        out_shape=jax.ShapeDtypeStruct((num_blocks, 8, 128), jnp.float32),
        grid_spec=pltpu.PrefetchScalarGridSpec(
            num_scalar_prefetch=0,
            grid=(num_blocks,),
            in_specs=[
                pl.BlockSpec((br, width), lambda i: (i, 0)),
                pl.BlockSpec((br, width), lambda i: (i, 0)),
            ],
            out_specs=pl.BlockSpec((1, 8, 128), lambda i: (i, 0, 0)),
        ),
        compiler_params=pltpu.CompilerParams(
            # Independent per-block partials -> both v7x TensorCores can run.
            dimension_semantics=("parallel",),
            vmem_limit_bytes=48 * 1024 * 1024,
        ),
        cost_estimate=cost,
    )(p2, t2)

    # Tiny final reduction over per-block partial sums.
    return jnp.sum(partials[:, 0, 0])


def _reference(preds, targets, alpha, beta):
    # Pure-JAX reference mirroring the PyTorch module.
    x = preds.astype(jnp.float32)
    t = targets.astype(jnp.float32)
    bce = jnp.mean(jnp.maximum(x, 0.0) - x * t + jnp.log1p(jnp.exp(-jnp.abs(x))))
    p = jnp.clip(jax.nn.sigmoid(x), 1e-7, 1.0)
    lbl = jnp.clip(t, 1e-4, 1.0)
    rce = jnp.mean(-jnp.sum(p * jnp.log(lbl), axis=1))
    return alpha * bce + beta * rce


def _check(name, got, want, rtol=1e-4, atol=1e-4):
    if not jnp.allclose(got, want, rtol=rtol, atol=atol):
        raise AssertionError(f"mismatch ({name}): pallas={got}, ref={want}")


if __name__ == "__main__":
    key = jax.random.PRNGKey(0)
    k1, k2, k3, k4, k5, k6 = jax.random.split(key, 6)

    alpha, beta = 0.5, 1.0            # module __init__ hyper-params

    # Case 1: small (batch, num_classes) — single lane-dense block.
    N, C = 8, 16
    preds = jax.random.normal(k1, (N, C), dtype=jnp.float32)
    targets = jax.random.bernoulli(k2, p=0.3, shape=(N, C)).astype(jnp.float32)
    ref = _reference(preds, targets, alpha, beta)
    loss = jax.block_until_ready(symetric_bce_loss(preds, targets, alpha, beta))
    _check("case 1 soft path", loss, ref)
    loss_h = jax.block_until_ready(
        symetric_bce_loss(preds, targets, alpha, beta, hard_labels=True))
    _check("case 1 hard-label path", loss_h, ref)

    # Case 2: force a multi-block grid with a ragged (masked) last block.
    N2, C2 = 32, 100
    preds2 = jax.random.normal(k3, (N2, C2), dtype=jnp.float32)
    targets2 = jax.random.bernoulli(k4, p=0.3, shape=(N2, C2)).astype(jnp.float32)
    ref2 = _reference(preds2, targets2, alpha, beta)
    loss2 = jax.block_until_ready(
        symetric_bce_loss(preds2, targets2, alpha, beta, block_rows=8))
    _check("case 2 ragged multi-block", loss2, ref2)

    # Case 3: 4-D input, soft labels; total not a multiple of 128 exercises the
    # zero-copy general layout (width = largest divisor <= 512) and the log path.
    preds3 = jax.random.normal(k5, (6, 7, 5, 5), dtype=jnp.float32)
    targets3 = jax.random.uniform(k6, (6, 7, 5, 5), dtype=jnp.float32)
    ref3 = _reference(preds3, targets3, alpha, beta)
    loss3 = jax.block_until_ready(symetric_bce_loss(preds3, targets3, alpha, beta))
    _check("case 3 general layout", loss3, ref3)

    print("KERNEL_OK")
</pallas_src>

<mosaic_0001>
module attributes {stable_mosaic.version = 11 : i64} {
  func.func @_symetric_bce_block_kernel(%arg0: i32, %arg1: memref<1x128xf32, #tpu.memory_space<vmem>>, %arg2: memref<1x128xf32, #tpu.memory_space<vmem>>, %arg3: memref<1x8x128xf32, #tpu.memory_space<vmem>>) attributes {dimension_semantics = [#tpu.dimension_semantics<parallel>], iteration_bounds = array<i64: 1>, scalar_prefetch = 0 : i64, scratch_operands = 0 : i64, tpu.core_type = #tpu.core_type<tc>, window_params = [{transform_indices = @transform_0, window_bounds = array<i64: 1, 128>}, {transform_indices = @transform_1, window_bounds = array<i64: 1, 128>}, {transform_indices = @transform_2, window_bounds = array<i64: 1, 8, 128>}]} {
    %c0 = arith.constant 0 : index
    %c0_0 = arith.constant 0 : index
    %0 = vector.load %arg1[%c0, %c0_0] : memref<1x128xf32, #tpu.memory_space<vmem>>, vector<1x128xf32>
    %c0_1 = arith.constant 0 : index
    %c0_2 = arith.constant 0 : index
    %1 = vector.load %arg2[%c0_1, %c0_2] : memref<1x128xf32, #tpu.memory_space<vmem>>, vector<1x128xf32>
    %2 = math.absf %0 : vector<1x128xf32>
    %cst = arith.constant 0.000000e+00 : f32
    %3 = vector.broadcast %cst : f32 to vector<1x128xf32>
    %4 = arith.subf %3, %2 : vector<1x128xf32>
    %5 = math.exp %4 : vector<1x128xf32>
    %cst_3 = arith.constant 1.000000e+00 : f32
    %6 = vector.broadcast %cst_3 : f32 to vector<1x128xf32>
    %7 = arith.addf %6, %5 : vector<1x128xf32>
    %cst_4 = arith.constant 0.000000e+00 : f32
    %8 = vector.broadcast %cst_4 : f32 to vector<1x128xf32>
    %9 = arith.maximumf %0, %8 : vector<1x128xf32>
    %10 = arith.mulf %0, %1 : vector<1x128xf32>
    %11 = arith.subf %9, %10 : vector<1x128xf32>
    %12 = math.log %7 : vector<1x128xf32>
    %13 = arith.addf %11, %12 : vector<1x128xf32>
    %cst_5 = arith.constant 0.470588237 : f32
    %14 = vector.broadcast %cst_5 : f32 to vector<1x128xf32>
    %15 = arith.mulf %14, %7 : vector<1x128xf32>
    %cst_6 = arith.constant 1.41176474 : f32
    %16 = vector.broadcast %cst_6 : f32 to vector<1x128xf32>
    %17 = arith.subf %16, %15 : vector<1x128xf32>
    %18 = arith.mulf %7, %17 : vector<1x128xf32>
    %cst_7 = arith.constant 2.000000e+00 : f32
    %19 = vector.broadcast %cst_7 : f32 to vector<1x128xf32>
    %20 = arith.subf %19, %18 : vector<1x128xf32>
    %21 = arith.mulf %17, %20 : vector<1x128xf32>
    %22 = arith.mulf %7, %21 : vector<1x128xf32>
    %cst_8 = arith.constant 2.000000e+00 : f32
    %23 = vector.broadcast %cst_8 : f32 to vector<1x128xf32>
    %24 = arith.subf %23, %22 : vector<1x128xf32>
    %25 = arith.mulf %21, %24 : vector<1x128xf32>
    %26 = arith.mulf %7, %25 : vector<1x128xf32>
    %cst_9 = arith.constant 2.000000e+00 : f32
    %27 = vector.broadcast %cst_9 : f32 to vector<1x128xf32>
    %28 = arith.subf %27, %26 : vector<1x128xf32>
    %29 = arith.mulf %25, %28 : vector<1x128xf32>
    %cst_10 = arith.constant 0.000000e+00 : f32
    %30 = vector.broadcast %cst_10 : f32 to vector<1x128xf32>
    %31 = arith.cmpf oge, %0, %30 : vector<1x128xf32>
    %cst_11 = arith.constant 1.000000e+00 : f32
    %32 = vector.broadcast %cst_11 : f32 to vector<1x128xf32>
    %33 = arith.select %31, %32, %5 : vector<1x128xi1>, vector<1x128xf32>
    %34 = arith.mulf %33, %29 : vector<1x128xf32>
    %cst_12 = arith.constant 1.000000e-07 : f32
    %cst_13 = arith.constant 1.000000e+00 : f32
    %35 = vector.broadcast %cst_12 : f32 to vector<1x128xf32>
    %36 = arith.maximumf %35, %34 : vector<1x128xf32>
    %37 = vector.broadcast %cst_13 : f32 to vector<1x128xf32>
    %38 = arith.minimumf %37, %36 : vector<1x128xf32>
    %cst_14 = arith.constant 9.99999974E-5 : f32
    %cst_15 = arith.constant 1.000000e+00 : f32
    %39 = vector.broadcast %cst_14 : f32 to vector<1x128xf32>
    %40 = arith.maximumf %39, %1 : vector<1x128xf32>
    %41 = vector.broadcast %cst_15 : f32 to vector<1x128xf32>
    %42 = arith.minimumf %41, %40 : vector<1x128xf32>
    %43 = math.log %42 : vector<1x128xf32>
    %cst_16 = arith.constant 3.906250e-03 : f32
    %44 = vector.broadcast %cst_16 : f32 to vector<1x128xf32>
    %45 = arith.mulf %44, %13 : vector<1x128xf32>
    %cst_17 = arith.constant 1.250000e-01 : f32
    %46 = vector.broadcast %cst_17 : f32 to vector<1x128xf32>
    %47 = arith.mulf %46, %38 : vector<1x128xf32>
    %48 = arith.mulf %47, %43 : vector<1x128xf32>
    %49 = arith.subf %45, %48 : vector<1x128xf32>
    %50 = vector.shape_cast %49 : vector<1x128xf32> to vector<1x1x128xf32>
    %cst_18 = arith.constant dense<0.000000e+00> : vector<1xf32>
    %51 = vector.multi_reduction <add>, %50, %cst_18 [1, 2] : vector<1x1x128xf32> to vector<1xf32>
    %52 = vector.shape_cast %51 : vector<1xf32> to vector<1x1x1xf32>
    %53 = vector.extract %52[0, 0, 0] : f32 from vector<1x1x1xf32>
    %54 = vector.broadcast %53 : f32 to vector<1x8x128xf32>
    %c0_19 = arith.constant 0 : index
    %c0_20 = arith.constant 0 : index
    %c0_21 = arith.constant 0 : index
    %55 = vector.load %arg3[%c0_19, %c0_20, %c0_21] : memref<1x8x128xf32, #tpu.memory_space<vmem>>, vector<1x8x128xf32>
    tpu.vector_store %arg3[%c0_19, %c0_20, %c0_21], %54 {strides = array<i32>} : memref<1x8x128xf32, #tpu.memory_space<vmem>>, vector<1x8x128xf32>,
    return
  }
  func.func @transform_0(%arg0: i32) -> (i32, i32) {
    %c0_i32 = arith.constant 0 : i32
    %c0_i32_0 = arith.constant 0 : i32
    return %arg0, %c0_i32 : i32, i32
  }
  func.func @transform_1(%arg0: i32) -> (i32, i32) {
    %c0_i32 = arith.constant 0 : i32
    %c0_i32_0 = arith.constant 0 : i32
    return %arg0, %c0_i32 : i32, i32
  }
  func.func @transform_2(%arg0: i32) -> (i32, i32, i32) {
    %c0_i32 = arith.constant 0 : i32
    %c0_i32_0 = arith.constant 0 : i32
    %c0_i32_1 = arith.constant 0 : i32
    return %arg0, %c0_i32, %c0_i32_0 : i32, i32, i32
  }
}

</mosaic_0001>

<bundles_post_ra>
// kernel: tpu_custom_call.1
= control target key start
LH: loop header
LB: loop body
LE: loop exit
PB: predicated region body
PF: predicated region fallthrough
CT: control target
= control target key end

     0   :  { %7 = vsyncpa [#allocation3], 0  ;;  %s191_s0 = inlined_call_operand.hbm [shape: f32[1,128], index: 0, kind: input, shape index: {}]   ;;  %s192_s1 = inlined_call_operand.vmem [shape: f32[1,128], index: 1, kind: input, shape index: {}]   ;;  %s193_s2 = inlined_call_operand.hbm [shape: f32[1,8,128], index: 2, kind: output, shape index: {}]  }
   0x1   :  { %8 = vsyncpa [#allocation4], 0  ;;  %s147_s9 = smov [#allocation2]   ;;  %s99_s13 = scalar_lea.hbm %s191_s0, 16 }
   0x2   :  { %s15_s10 = sshll.u32 %s147_s9, 4  ;;  %p100_p0 = scmp.ne.s32.totalorder %s191_s0, %s99_s13  ;;  %s16_s10 = int_to_ptr.vmem [resolvable:$true] %s15_s10 }
   0x3   :  { %p103_p1 = scmp.lt.u32.totalorder %s99_s13, %s191_s0 }
   0x5   :  { %p105_p2 = pnand %p103_p1, %p100_p0 }
   0x7   :  { %108 = shalt.err (!%p105_p2)
}
   0x8   :  { %s109_s18 = scalar_lea.vmem %s16_s10, 16  ;;  %s113_s19 = scalar_lea.vmem %s16_s10, 32 }
   0x9   :  { %p110_p3 = scmp.ne.s32.totalorder %s16_s10, %s109_s18  ;;  %p114_p4 = scmp.lt.s32.totalorder %s16_s10, %s16_s10 }
   0xa   :  { %p115_p5 = scmp.lt.s32.totalorder %s113_s19, %s109_s18 }
   0xc   :  { %p116_p6 = por %p115_p5, %p114_p4 }
   0xe   :  { %p117_p7 = pnand %p116_p6, %p110_p3 }
  0x10   :  { %120 = shalt.err (!%p117_p7)
}
  0x11   :  { %18 = dma.hbm_to_vmem [thread:$0]  %s191_s0, 16, %s16_s10, [#allocation3]  }
  0x12   :  { %143 = dma.done.wait [#allocation3], 16  }
  0x13   :  { %144 = vsyncadd [#allocation3], 4294967280  ;;  %v24_v0 = vld [vmem:[#allocation2] sm:$0x1]  ;;  %vm61_vm1 = vcmask 1040384   ;;  %s148_s0 = smov [#allocation5]  }
  0x14   :  { %v26_v1 = vand.u32 2147483647, %v24_v0  ;;  %v25_v7 = vld [vmem:[%s192_s1] sm:$0x1]  ;;  %v31_v17 = vmax.f32 %v24_v0, 0.0  ;;  %vm48_vm0 = vcmp.ge.f32.partialorder %v24_v0, 0.0 }
  0x15   :  { %v53_v10 = vmax.f32 %v25_v7, 0.0001  ;;  %v32_v18 = vmul.f32 %v25_v7, %v24_v0  ;;  %s80_s1 = sshll.u32 %s148_s0, 4  ;;  %s81_s1 = int_to_ptr.vmem [resolvable:$true] %s80_s1 }
  0x16   :  { %v27_v2 = vsub.f32 0.0, %v26_v1  ;;  %s121_s25 = scalar_lea.vmem %s81_s1, 128  ;;  %p126_p9 = scmp.lt.s32.totalorder %s81_s1, %s81_s1 }
  0x17   :  { %v54_v13 = vmin.f32 %v53_v10, 1.0  ;;  %v33_v23 = vsub.f32 %v31_v17, %v32_v18  ;;  %p122_p8 = scmp.ne.s32.totalorder %s81_s1, %s121_s25  ;;  %p127_p10 = scmp.lt.s32.totalorder %s121_s25, %s121_s25 }
  0x18   :  { %v28_v3 = vmul.f32 1.442695, %v27_v2 }
  0x19   :  { %p128_p11 = por %p127_p10, %p126_p9 }
  0x1a   :  { %93 = vpow2.f32 %v28_v3 }
  0x1b   :  { %p129_p12 = pnand %p128_p11, %p122_p8 }
  0x24   :  { %v94_v4 = vpop.eup %93 }
  0x25   :  { %v30_v5 = vadd.f32 1.0, %v94_v4  ;;  %v49_v22 = vsel %vm48_vm0, 1.0, %v94_v4 }
  0x27   :  { %v37_v6 = vmul.f32 0.47058824, %v30_v5  ;;  %95 = vlog2.f32 %v30_v5 }
  0x28   :  { %97 = vlog2.f32 %v54_v13 }
  0x29   :  { %v38_v8 = vsub.f32 1.4117647, %v37_v6 }
  0x2b   :  { %v39_v9 = vmul.f32 %v38_v8, %v30_v5 }
  0x2d   :  { %v40_v11 = vsub.f32 2.0, %v39_v9 }
  0x2f   :  { %v41_v12 = vmul.f32 %v40_v11, %v38_v8 }
  0x31   :  { %v42_v14 = vmul.f32 %v41_v12, %v30_v5  ;;  %v96_v20 = vpop.eup %95 }
  0x32   :  { %v35_v24 = vmul.f32 0.6931472, %v96_v20  ;;  %v98_v27 = vpop.eup %97 }
  0x33   :  { %v43_v15 = vsub.f32 2.0, %v42_v14  ;;  %v56_v31 = vmul.f32 0.6931472, %v98_v27 }
  0x34   :  { %v36_v28 = vadd.f32 %v35_v24, %v33_v23 }
  0x35   :  { %v44_v16 = vmul.f32 %v43_v15, %v41_v12 }
  0x36   :  { %v57_v32 = vmul.f32 0.00390625, %v36_v28 }
  0x37   :  { %v45_v19 = vmul.f32 %v44_v16, %v30_v5 }
  0x39   :  { %v46_v21 = vsub.f32 2.0, %v45_v19 }
  0x3b   :  { %v47_v25 = vmul.f32 %v46_v21, %v44_v16 }
  0x3d   :  { %v50_v26 = vmul.f32 %v49_v22, %v47_v25 }
  0x3f   :  { %v51_v29 = vmax.f32 %v50_v26, 1e-07 }
  0x41   :  { %v52_v30 = vmin.f32 %v51_v29, 1.0 }
  0x43   :  { %v58_v33 = vmul.f32 0.125, %v52_v30 }
  0x45   :  { %v59_v34 = vmul.f32 %v58_v33, %v56_v31 }
  0x47   :  { %v60_v35 = vsub.f32 %v57_v32, %v59_v34 }
  0x49   :  { %v62_v36 = vsel %vm61_vm1, %v60_v35, 0.0 }
  0x4a   :  { %63 = vadd.xlane.f32.xlu0 %v62_v36 }
  0xd7   :  { %v64_v37 = vpop.xlane.xlu0 %63 }
  0xd8   :  { %v65_v38 = vrot.slane %v64_v37, 4 }
  0xda   :  { %v66_v39 = vadd.f32 %v65_v38, %v64_v37 }
  0xdc   :  { %v67_v40 = vrot.slane %v66_v39, 2 }
  0xde   :  { %v68_v41 = vadd.f32 %v67_v40, %v66_v39 }
  0xe0   :  { %v69_v42 = vrot.slane %v68_v41, 1 }
  0xe2   :  { %v70_v43 = vadd.f32 %v69_v42, %v68_v41 }
  0xe4   :  { %89 = vpush %v70_v43 }
 0x115   :  { %s90_s24 = spop %89 }
 0x116   :  { %v72_v44 = vstv %s90_s24 }
 0x117   :  { %73 = vst [vmem:[#allocation5] sm:$0xff] %v72_v44 }
 0x118   :  { %132 = shalt.err (!%p129_p12)
}
 0x119   :  { %s133_s28 = scalar_lea.hbm %s193_s2, 128 }
 0x11a   :  { %p134_p13 = scmp.ne.s32.totalorder %s193_s2, %s133_s28  ;;  %p137_p0 = scmp.lt.u32.totalorder %s133_s28, %s193_s2 }
 0x11c   :  { %p139_p1 = pnand %p137_p0, %p134_p13 }
 0x11e   :  { %142 = shalt.err (!%p139_p1)
}
 0x11f   :  { %83 = dma.vmem_to_hbm [thread:$0]  %s81_s1, 128, %s193_s2, [#allocation4]  }
 0x120   :  { %145 = dma.done.wait [#allocation4], 128  }
 0x121   :  { %146 = vsyncadd [#allocation4], 4294967168 }
 0x122   :  { %87 = vsyncpa [#allocation3], 1 }
 0x123   :  { %88 = vsyncpa [#allocation4], 1 }

</bundles_post_ra>
